<compile_context>
chip_gen: v6e
topology: v6e:2x2x1
jax: 0.10.0
libtpu: 0.0.40
codegen_flags: <defaults>
</compile_context>

<pallas_src>
import functools

import numpy as np
import jax
import jax.numpy as jnp
from jax import lax
from jax.experimental import pallas as pl
from jax.experimental.pallas import tpu as pltpu


# --------------------------------------------------------------------------------------
# pltpu.roll convention probe (tiny one-off kernel) so the shifted-matmul im2col is
# convention-independent.
# --------------------------------------------------------------------------------------
_ROLL_MATCHES_JNP = None


def _roll_matches_jnp() -> bool:
    global _ROLL_MATCHES_JNP
    if _ROLL_MATCHES_JNP is None:
        def probe(x_ref, o_ref):
            o_ref[...] = pltpu.roll(x_ref[...], 1, axis=1)

        x = jnp.arange(128, dtype=jnp.float32).reshape(1, 128)
        r = pl.pallas_call(
            probe, out_shape=jax.ShapeDtypeStruct((1, 128), jnp.float32))(x)
        # jnp.roll(x, 1)[0] == 127 ; the opposite convention gives 1.
        _ROLL_MATCHES_JNP = bool(jax.device_get(r)[0, 0] == 127.0)
    return _ROLL_MATCHES_JNP


# --------------------------------------------------------------------------------------
# In-kernel helpers (all on the (C, M) layout, M = N*H*W, w fastest).
# --------------------------------------------------------------------------------------
def _shift_flat(a, offset, roll_like_jnp):
    """b with b[:, p] = a[:, (p + offset) % M]; wrapped entries masked by the caller."""
    if offset == 0:
        return a
    m = a.shape[-1]
    shift = (-offset) % m if roll_like_jnp else offset % m
    return pltpu.roll(a, shift, axis=1)


def _bn_relu(a, g_ref, b_ref, eps=1e-5):
    """Training-mode BatchNorm2d (batch stats, biased var) folded to scale/shift, + ReLU."""
    inv_m = 1.0 / a.shape[1]
    s1 = jnp.sum(a, axis=1, keepdims=True)
    s2 = jnp.sum(a * a, axis=1, keepdims=True)
    mean = s1 * inv_m
    var = s2 * inv_m - mean * mean            # one-pass variance (f32, fine post-BN scale)
    scale = g_ref[...] * lax.rsqrt(var + eps)
    shift = b_ref[...] - mean * scale
    return jnp.maximum(a * scale + shift, 0.0)


def _conv1x1(a, w_ref):
    return jnp.dot(w_ref[...], a.astype(jnp.bfloat16),
                   preferred_element_type=jnp.float32)


def _conv3x3_same(a, w_ref, mask_ref, width, roll_like_jnp):
    """3x3 'same' conv at stride 1 on (Cin, M): single K=9*Cin MXU matmul.

    The 9 roll-shifted operands are masked in f32, concatenated along sublanes and cast to
    bf16 once; w_ref is the host-prepared (Cout, 9*Cin) bf16 weight matrix (tap-major,
    Cin-minor to match the concat order)."""
    m = a.shape[1]
    parts = []
    for ky in range(3):
        for kx in range(3):
            dy, dx = ky - 1, kx - 1
            shifted = _shift_flat(a, dy * width + dx, roll_like_jnp)
            if not (dy == 0 and dx == 0):            # center tap mask is all-ones -> skip
                shifted = shifted * mask_ref[ky * 3 + kx:ky * 3 + kx + 1, :]
            parts.append(shifted)
    patches = jnp.concatenate(parts, axis=0).astype(jnp.bfloat16)   # (9*Cin, M)
    return jnp.dot(w_ref[...], patches, preferred_element_type=jnp.float32)


def _bottleneck(x, it, mask_ref, width, stride, subsample, has_downsample, roll_like_jnp):
    """Pre-activation Bottleneck (expansion=1), all VMEM-resident."""
    bn1g, bn1b, w1, bn2g, bn2b, w2, bn3g, bn3b, w3 = [next(it) for _ in range(9)]
    wd = next(it) if has_downsample else None

    residual = x
    out = _bn_relu(x, bn1g, bn1b)                                 # bn1 + relu
    # channel_selection: all-ones indexes -> identity
    out = _conv1x1(out, w1)                                       # conv1 1x1
    out = _bn_relu(out, bn2g, bn2b)                               # bn2 + relu
    out = _conv3x3_same(out, w2, mask_ref, width, roll_like_jnp)  # conv2 3x3 (full res)
    if stride == 2:
        out = subsample(out)                                      # fold conv2's stride
    out = _bn_relu(out, bn3g, bn3b)                               # bn3 + relu
    if has_downsample:
        res_in = x if stride == 1 else subsample(x)
        residual = _conv1x1(res_in, wd)                           # downsample(x): 1x1 stride s
    # conv3 1x1 with the residual add fused
    out = jnp.dot(w3[...], out.astype(jnp.bfloat16),
                  preferred_element_type=jnp.float32) + residual
    return out


def _make_kernel(batch, h0, w0, roll_like_jnp):
    hw_full = h0 * w0
    hw_half = (h0 // 2) * (w0 // 2)

    def kernel(*refs):
        out_ref = refs[-1]
        it = iter(refs[:-1])
        x_ref, s1_ref, s2_ref, pool_ref, mf_ref, mh_ref, w_stem = \
            [next(it) for _ in range(7)]

        def sub_full(a):
            # Per-image block-diagonal stride-2 selection at full resolution.
            parts = []
            for i in range(batch):
                blk = a[:, i * hw_full:(i + 1) * hw_full].astype(jnp.bfloat16)
                parts.append(jnp.dot(blk, s1_ref[...],
                                     preferred_element_type=jnp.float32))
            return jnp.concatenate(parts, axis=1)

        def sub_half(a):
            # Half-res selection matrix is tiny; one matmul keeps the output lane-aligned.
            return jnp.dot(a.astype(jnp.bfloat16), s2_ref[...],
                           preferred_element_type=jnp.float32)

        # stem: 3x3, stride 1, pad 1 (input channels zero-padded to 8)
        x = _conv3x3_same(x_ref[...], w_stem, mf_ref, w0, roll_like_jnp)

        x = _bottleneck(x, it, mf_ref, w0, 1, None, False, roll_like_jnp)       # layer1
        x = _bottleneck(x, it, mf_ref, w0, 2, sub_full, True, roll_like_jnp)    # layer2
        x = _bottleneck(x, it, mh_ref, w0 // 2, 2, sub_half, True, roll_like_jnp)  # layer3

        bng, bnb, fcw, fcb = [next(it) for _ in range(4)]
        x = _bn_relu(x, bng, bnb)                                           # final bn + relu
        pooled = jnp.dot(x.astype(jnp.bfloat16), pool_ref[...],
                         preferred_element_type=jnp.float32)                # AvgPool2d(8): (C, N)
        logits = jnp.dot(fcw[...], pooled.astype(jnp.bfloat16),
                         preferred_element_type=jnp.float32) + fcb[...]     # fc: (ncls, N)
        out_ref[...] = logits

    return kernel


# --------------------------------------------------------------------------------------
# Host-side constant builders (static shapes only).
# --------------------------------------------------------------------------------------
def _subsample_block(H, W):
    """(H*W, H*W/4) 0/1 block selecting even rows/cols of ONE image."""
    Ho, Wo = H // 2, W // 2
    S = np.zeros((H * W, Ho * Wo), np.float32)
    for ho in range(Ho):
        for wo in range(Wo):
            S[2 * ho * W + 2 * wo, ho * Wo + wo] = 1.0
    return S


def _subsample_matrix(N, H, W):
    """Full block-diagonal (N*H*W, N*H*W/4) selection matrix (used only at half res)."""
    blk = _subsample_block(H, W)
    hw, hwo = H * W, (H // 2) * (W // 2)
    S = np.zeros((N * hw, N * hwo), np.float32)
    for n in range(N):
        S[n * hw:(n + 1) * hw, n * hwo:(n + 1) * hwo] = blk
    return S


def _pool_matrix(N, hw):
    P = np.zeros((N * hw, N), np.float32)
    for n in range(N):
        P[n * hw:(n + 1) * hw, n] = 1.0 / hw
    return P


def _host_masks(N, H, W):
    """(9, N*H*W) f32 validity masks for every 3x3 tap, row index ky*3+kx."""
    M = N * H * W
    p = np.arange(M)
    w = p % W
    h = (p // W) % H
    masks = np.ones((9, M), np.float32)
    for ky in range(3):
        for kx in range(3):
            dy, dx = ky - 1, kx - 1
            valid = np.ones(M, bool)
            if dy == -1:
                valid &= h >= 1
            if dy == 1:
                valid &= h <= H - 2
            if dx == -1:
                valid &= w >= 1
            if dx == 1:
                valid &= w <= W - 2
            masks[ky * 3 + kx] = valid.astype(np.float32)
    return masks


def _taps_fused(w):  # (Cout, Cin, 3, 3) torch layout -> (Cout, 9*Cin) bf16 (tap-major, Cin-minor)
    co, ci = w.shape[0], w.shape[1]
    return jnp.transpose(w, (0, 2, 3, 1)).reshape(co, 9 * ci).astype(jnp.bfloat16)


def _w1x1(w):        # (Cout, Cin, 1, 1) -> (Cout, Cin) bf16
    return w[:, :, 0, 0].astype(jnp.bfloat16)


def _col(v):         # (C,) -> (C, 1) f32 (broadcast over lanes inside the kernel)
    return v.reshape(-1, 1).astype(jnp.float32)


BLOCK_CFG = (
    dict(stride=1, has_ds=False),   # layer1 @ 32x32
    dict(stride=2, has_ds=True),    # layer2 @ 32x32 -> 16x16
    dict(stride=2, has_ds=True),    # layer3 @ 16x16 -> 8x8
)


# --------------------------------------------------------------------------------------
# Public forward: accepts the PyTorch NCHW input, runs one fused Pallas kernel.
# --------------------------------------------------------------------------------------
def bottleneck_presnet_forward(x_nchw, params):
    return _forward_jit(x_nchw, params, _roll_matches_jnp())


@functools.partial(jax.jit, static_argnums=(2,))
def _forward_jit(x_nchw, params, roll_like_jnp):
    N, C, H, W = x_nchw.shape
    assert (H & (H - 1)) == 0 and (W & (W - 1)) == 0, "spatial dims must be powers of two"
    num_classes = params["fc_w"].shape[0]

    # NCHW -> lane-dense (C, N*H*W); pad input channels 3 -> 8 so every MXU K is a
    # multiple of 8 sublanes.
    x_cm = jnp.transpose(x_nchw, (1, 0, 2, 3)).reshape(C, N * H * W).astype(jnp.float32)
    cpad = (-C) % 8
    if cpad:
        x_cm = jnp.concatenate([x_cm, jnp.zeros((cpad, N * H * W), jnp.float32)], axis=0)
    w_stem = params["conv1_w"]
    if cpad:
        w_stem = jnp.concatenate(
            [w_stem, jnp.zeros((w_stem.shape[0], cpad, 3, 3), w_stem.dtype)], axis=1)

    s1 = jnp.asarray(_subsample_block(H, W), jnp.bfloat16)                 # per-image block
    s2 = jnp.asarray(_subsample_matrix(N, H // 2, W // 2), jnp.bfloat16)   # small full matrix
    pool = jnp.asarray(_pool_matrix(N, (H // 4) * (W // 4)), jnp.bfloat16)
    masks_full = jnp.asarray(_host_masks(N, H, W), jnp.float32)
    masks_half = jnp.asarray(_host_masks(N, H // 2, W // 2), jnp.float32)

    inputs = [x_cm, s1, s2, pool, masks_full, masks_half, _taps_fused(w_stem)]
    for name, cfg in zip(("layer1", "layer2", "layer3"), BLOCK_CFG):
        bp = params[name]
        inputs += [_col(bp["bn1_g"]), _col(bp["bn1_b"]), _w1x1(bp["w1"]),
                   _col(bp["bn2_g"]), _col(bp["bn2_b"]), _taps_fused(bp["w2"]),
                   _col(bp["bn3_g"]), _col(bp["bn3_b"]), _w1x1(bp["w3"])]
        if cfg["has_ds"]:
            inputs.append(_w1x1(bp["wd"]))
    inputs += [_col(params["bn_g"]), _col(params["bn_b"]),
               params["fc_w"].astype(jnp.bfloat16),
               params["fc_b"].reshape(-1, 1).astype(jnp.float32)]

    vmem = pl.BlockSpec(memory_space=pltpu.MemorySpace.VMEM)
    logits_t = pl.pallas_call(
        _make_kernel(N, H, W, roll_like_jnp),
        out_shape=jax.ShapeDtypeStruct((num_classes, N), jnp.float32),
        in_specs=[vmem] * len(inputs),
        out_specs=vmem,
        compiler_params=pltpu.CompilerParams(vmem_limit_bytes=32 * 1024 * 1024),
    )(*inputs)
    return logits_t.T                                            # (N, num_classes)


# --------------------------------------------------------------------------------------
# Pure-JAX f32 reference (NCHW), for a numerical check of the fused kernel.
# --------------------------------------------------------------------------------------
def _ref_conv(x, w, stride, pad):
    return lax.conv_general_dilated(
        x, w, (stride, stride), ((pad, pad), (pad, pad)),
        dimension_numbers=("NCHW", "OIHW", "NCHW"),
        precision=lax.Precision.HIGHEST)


def _ref_bn_relu(x, g, b, eps=1e-5):
    mean = jnp.mean(x, axis=(0, 2, 3), keepdims=True)
    var = jnp.mean(jnp.square(x - mean), axis=(0, 2, 3), keepdims=True)
    xhat = (x - mean) * lax.rsqrt(var + eps)
    return jnp.maximum(xhat * g.reshape(1, -1, 1, 1) + b.reshape(1, -1, 1, 1), 0.0)


@jax.jit
def reference_forward(x, params):
    x = _ref_conv(x.astype(jnp.float32), params["conv1_w"], 1, 1)
    for name, cfg in zip(("layer1", "layer2", "layer3"), BLOCK_CFG):
        bp = params[name]
        residual = x
        out = _ref_bn_relu(x, bp["bn1_g"], bp["bn1_b"])
        out = _ref_conv(out, bp["w1"], 1, 0)
        out = _ref_bn_relu(out, bp["bn2_g"], bp["bn2_b"])
        out = _ref_conv(out, bp["w2"], cfg["stride"], 1)
        out = _ref_bn_relu(out, bp["bn3_g"], bp["bn3_b"])
        if cfg["has_ds"]:
            residual = _ref_conv(x, bp["wd"], cfg["stride"], 0)
        x = _ref_conv(out, bp["w3"], 1, 0) + residual
    x = _ref_bn_relu(x, params["bn_g"], params["bn_b"])
    x = jnp.mean(x, axis=(2, 3))                       # AvgPool2d(8) + flatten
    return jnp.matmul(x, params["fc_w"].T, precision=lax.Precision.HIGHEST) + params["fc_b"]


# --------------------------------------------------------------------------------------
# Parameter init (PyTorch-canonical layouts: conv (Cout,Cin,kh,kw), fc (out,in)).
# --------------------------------------------------------------------------------------
def _conv_w(key, cout, cin, k):
    return 0.1 * jax.random.normal(key, (cout, cin, k, k), jnp.float32)


def _make_block(key, inplanes, cfg, planes, downsample):
    ks = jax.random.split(key, 4)
    p = dict(
        bn1_g=jnp.ones((inplanes,), jnp.float32), bn1_b=jnp.zeros((inplanes,), jnp.float32),
        w1=_conv_w(ks[0], cfg[1], cfg[0], 1),
        bn2_g=jnp.ones((cfg[1],), jnp.float32), bn2_b=jnp.zeros((cfg[1],), jnp.float32),
        w2=_conv_w(ks[1], cfg[2], cfg[1], 3),
        bn3_g=jnp.ones((cfg[2],), jnp.float32), bn3_b=jnp.zeros((cfg[2],), jnp.float32),
        w3=_conv_w(ks[2], planes, cfg[2], 1),
    )
    if downsample:
        p["wd"] = _conv_w(ks[3], planes, inplanes, 1)
    return p


def init_params(key, num_classes=10):
    ks = jax.random.split(key, 6)
    return dict(
        conv1_w=_conv_w(ks[0], 16, 3, 3),
        layer1=_make_block(ks[1], 16, (16, 8, 8), 16, downsample=False),
        layer2=_make_block(ks[2], 16, (16, 8, 8), 32, downsample=True),
        layer3=_make_block(ks[3], 32, (32, 16, 16), 64, downsample=True),
        bn_g=jnp.ones((64,), jnp.float32),
        bn_b=jnp.zeros((64,), jnp.float32),
        fc_w=0.1 * jax.random.normal(ks[4], (num_classes, 64), jnp.float32),
        fc_b=0.1 * jax.random.normal(ks[5], (num_classes,), jnp.float32),
    )


# --------------------------------------------------------------------------------------
if __name__ == "__main__":
    x = jax.random.normal(jax.random.PRNGKey(0), (2, 3, 32, 32), jnp.float32)  # NCHW
    params = init_params(jax.random.PRNGKey(1))

    out = jax.block_until_ready(bottleneck_presnet_forward(x, params))
    assert out.shape == (2, 10), out.shape
    assert bool(jnp.all(jnp.isfinite(out)))

    # Numerical check against the pure-JAX f32 reference (tolerance covers the bf16 MXU path).
    ref = jax.block_until_ready(reference_forward(x, params))
    np.testing.assert_allclose(np.asarray(out), np.asarray(ref), rtol=0.1, atol=0.1)

    print("KERNEL_OK")
</pallas_src>

<mosaic_0001>
module attributes {stable_mosaic.version = 11 : i64} {
  func.func @probe(%arg0: memref<1x128xf32, #tpu.memory_space<vmem>>, %arg1: memref<1x128xf32, #tpu.memory_space<vmem>>) attributes {dimension_semantics = [], scalar_prefetch = 0 : i64, scratch_operands = 0 : i64, tpu.core_type = #tpu.core_type<tc>} {
    %c0 = arith.constant 0 : index
    %c0_0 = arith.constant 0 : index
    %0 = vector.load %arg0[%c0, %c0_0] : memref<1x128xf32, #tpu.memory_space<vmem>>, vector<1x128xf32>
    %c1_i32 = arith.constant 1 : i32
    %1 = tpu.dynamic_rotate %0 by %c1_i32 dim 1 : vector<1x128xf32>, i32 -> vector<1x128xf32>
    %c0_1 = arith.constant 0 : index
    %c0_2 = arith.constant 0 : index
    %2 = vector.load %arg1[%c0_1, %c0_2] : memref<1x128xf32, #tpu.memory_space<vmem>>, vector<1x128xf32>
    tpu.vector_store %arg1[%c0_1, %c0_2], %1 {strides = array<i32>} : memref<1x128xf32, #tpu.memory_space<vmem>>, vector<1x128xf32>,
    return
  }
}

</mosaic_0001>

<bundles_post_ra>
// kernel: tpu_custom_call.1
= control target key start
LH: loop header
LB: loop body
LE: loop exit
PB: predicated region body
PF: predicated region fallthrough
CT: control target
= control target key end

     0   :  { %6 = vsyncpa [#allocation3], 0  ;;  %s106_s0 = inlined_call_operand.hbm [shape: f32[1,128], index: 0, kind: input, shape index: {}]   ;;  %s107_s1 = inlined_call_operand.hbm [shape: f32[1,128], index: 1, kind: output, shape index: {}]  }
   0x1   :  { %7 = vsyncpa [#allocation4], 0  ;;  %s87_s6 = smov [#allocation2]  }
   0x2   :  { %s14_s7 = sshll.u32 %s87_s6, 4  ;;  %s15_s7 = int_to_ptr.vmem [resolvable:$true] %s14_s7 }
   0x3   :  { %s51_s8 = scalar_lea.vmem %s15_s7, 16  ;;  %s55_s9 = scalar_lea.vmem %s15_s7, 32 }
   0x4   :  { %p52_p0 = scmp.ne.s32.totalorder %s15_s7, %s51_s8  ;;  %p56_p1 = scmp.lt.s32.totalorder %s15_s7, %s15_s7 }
   0x5   :  { %p57_p2 = scmp.lt.s32.totalorder %s55_s9, %s51_s8 }
   0x7   :  { %p58_p3 = por %p57_p2, %p56_p1 }
   0x9   :  { %p59_p4 = pnand %p58_p3, %p52_p0 }
   0xb   :  { %62 = shalt.err (!%p59_p4)
}
   0xc   :  { %17 = dma.hbm_to_vmem [thread:$0]  %s106_s0, 16, %s15_s7, [#allocation3]  }
   0xd   :  { %83 = dma.done.wait [#allocation3], 16  }
   0xe   :  { %84 = vsyncadd [#allocation3], 4294967280  ;;  %v21_v0 = vld [vmem:[#allocation2] sm:$0x1]  ;;  %s88_s12 = smov 1   ;;  %s89_s13 = smov [#allocation5]  }
   0xf   :  { %22 = vrot.lane.b32.xlu0 %v21_v0, %s88_s12  ;;  %s31_s14 = sshll.u32 %s89_s13, 4  ;;  %s32_s14 = int_to_ptr.vmem [resolvable:$true] %s31_s14 }
  0x10   :  { %s63_s15 = scalar_lea.vmem %s32_s14, 16  ;;  %s67_s16 = scalar_lea.vmem %s32_s14, 32 }
  0x11   :  { %p64_p5 = scmp.ne.s32.totalorder %s32_s14, %s63_s15  ;;  %p68_p6 = scmp.lt.s32.totalorder %s32_s14, %s32_s14 }
  0x12   :  { %p69_p7 = scmp.lt.s32.totalorder %s67_s16, %s63_s15 }
  0x14   :  { %p70_p8 = por %p69_p7, %p68_p6 }
  0x16   :  { %p71_p9 = pnand %p70_p8, %p64_p5 }
  0x81   :  { %v23_v1 = vpop.permute.xlu0 %22 }
  0x82   :  { %24 = vst [vmem:[#allocation5] sm:$0x1] %v23_v1 }
  0x83   :  { %74 = shalt.err (!%p71_p9)
}
  0x84   :  { %34 = dma.vmem_to_hbm [thread:$0]  %s32_s14, 16, %s107_s1, [#allocation4]  }
  0x85   :  { %85 = dma.done.wait [#allocation4], 16  }
  0x86   :  { %86 = vsyncadd [#allocation4], 4294967280 }
  0x87   :  { %38 = vsyncpa [#allocation3], 1 }
  0x88   :  { %39 = vsyncpa [#allocation4], 1 }

</bundles_post_ra>
